<compile_context>
chip_gen: v6e
topology: v6e:2x2x1
jax: 0.10.0
libtpu: 0.0.40
codegen_flags: <defaults>
</compile_context>

<pallas_src>
import functools

import jax
import jax.numpy as jnp
from jax.experimental import pallas as pl
from jax.experimental.pallas import tpu as pltpu

FUSION_RATIO = 0.1
LANES = 128  # TPU lane width; all packed slabs / the output tile are lane-dense.


# ----------------------------------- kernel -----------------------------------

def _fused_kernel(adj_a_ref, xa_ref, adj_f_ref, xf_ref, w_ref, b_ref, out_ref,
                  *, apig_dim, fcg_dim, hidden, united, n_a, n_f, w_off):
    f32 = jnp.float32
    (o_wa1, o_wf1, o_wa2, o_wf2, o_wl1, o_wl2, o_wcls) = w_off

    # ---- static slices into the packed parameter slabs (2 DMAs total) ----
    w_a1 = w_ref[o_wa1:o_wa1 + apig_dim, :hidden]
    w_f1 = w_ref[o_wf1:o_wf1 + fcg_dim, :hidden]
    w_a2 = w_ref[o_wa2:o_wa2 + hidden, :hidden]
    w_f2 = w_ref[o_wf2:o_wf2 + hidden, :hidden]
    w_l1 = w_ref[o_wl1:o_wl1 + hidden, :united]
    w_l2 = w_ref[o_wl2:o_wl2 + united, :hidden]
    w_cls = w_ref[o_wcls:o_wcls + hidden, :]          # (hidden, 128); lanes >= C are zero

    b_a1 = b_ref[0:1, :hidden]
    b_f1 = b_ref[1:2, :hidden]
    b_a2 = b_ref[2:3, :hidden]
    b_f2 = b_ref[3:4, :hidden]
    b_l1 = b_ref[4:5, :united]
    b_l2 = b_ref[5:6, :hidden]
    b_cls = b_ref[6:7, :]                             # (1, 128); lanes >= C are zero

    adj_a = adj_a_ref[...]
    adj_f = adj_f_ref[...]

    # ---- GraphConv layer 1 + ReLU:  h = relu(Â (X W) + b) ----
    h_a1 = jnp.maximum(
        jnp.dot(adj_a,
                jnp.dot(xa_ref[...], w_a1, preferred_element_type=f32),
                preferred_element_type=f32) + b_a1, 0.0)
    h_f1 = jnp.maximum(
        jnp.dot(adj_f,
                jnp.dot(xf_ref[...], w_f1, preferred_element_type=f32),
                preferred_element_type=f32) + b_f1, 0.0)

    # ---- shared encoder (linear1): one matmul over the stacked modalities ----
    h1 = jnp.concatenate([h_a1, h_f1], axis=0)                       # (n_a + n_f, hidden)
    enc = jnp.dot(h1, w_l1, preferred_element_type=f32) + b_l1       # (n_a + n_f, united)

    # ---- cross-modal fusion of per-graph sums ----
    a_enc = enc[:n_a, :]
    f_enc = enc[n_a:, :]
    a_sum = jnp.sum(a_enc, axis=0, keepdims=True)
    f_sum = jnp.sum(f_enc, axis=0, keepdims=True)
    enc_fused = jnp.concatenate(
        [a_enc + FUSION_RATIO * f_sum, f_enc + FUSION_RATIO * a_sum], axis=0)

    # ---- shared decoder (linear2): one matmul over the stacked modalities ----
    dec = jnp.dot(enc_fused, w_l2, preferred_element_type=f32) + b_l2
    a_dec = dec[:n_a, :]
    f_dec = dec[n_a:, :]

    # ---- GraphConv layer 2 + ReLU ----
    h_a2 = jnp.maximum(
        jnp.dot(adj_a,
                jnp.dot(a_dec, w_a2, preferred_element_type=f32),
                preferred_element_type=f32) + b_a2, 0.0)
    h_f2 = jnp.maximum(
        jnp.dot(adj_f,
                jnp.dot(f_dec, w_f2, preferred_element_type=f32),
                preferred_element_type=f32) + b_f2, 0.0)

    # ---- graph readouts: dgl.mean_nodes / dgl.max_nodes (one graph per block) ----
    apig_emb = jnp.mean(h_a2, axis=0, keepdims=True)   # (1, hidden)
    fcg_emb = jnp.max(h_f2, axis=0, keepdims=True)     # (1, hidden)

    # ---- Attention-module normalization, vectorized over both modalities ----
    # z-score with torch's unbiased std, then min-max (no epsilon, like the reference).
    emb2 = jnp.concatenate([apig_emb, fcg_emb], axis=0)               # (2, hidden)
    m = jnp.mean(emb2, axis=-1, keepdims=True)
    var = jnp.sum((emb2 - m) ** 2, axis=-1, keepdims=True) * (1.0 / (hidden - 1))
    z = (emb2 - m) * jax.lax.rsqrt(var)
    z_min = jnp.min(z, axis=-1, keepdims=True)
    z_max = jnp.max(z, axis=-1, keepdims=True)
    zn = (z - z_min) * pl.reciprocal(z_max - z_min, approx=True)

    # Attention: Linear(H,1) -> Softmax(dim=0) over a single scalar score is identically
    # 1.0 in the reference, so the attention-weighted sum reduces exactly to a_n + f_n.
    emb = zn[0:1, :] + zn[1:2, :]                                     # (1, hidden)

    # TODO(synk): nn.Dropout(0.5) is identity in eval mode; training-mode RNG mask not emitted.
    logits = jnp.dot(emb, w_cls, preferred_element_type=f32) + b_cls   # (1, 128), lane-dense
    out_ref[...] = jnp.broadcast_to(logits, out_ref.shape)             # unmasked (8,128) store


# --------------------------------- host wrapper ---------------------------------

def _pack_weights(params):
    """Concatenate all weight matrices row-wise into one (rows, 128) lane-dense slab."""
    order = ["w_a1", "w_f1", "w_a2", "w_f2", "w_l1", "w_l2", "w_cls"]
    pieces, offsets, off = [], {}, 0
    for name in order:
        w = params[name]
        fan_in, fan_out = w.shape
        pad_rows = (-fan_in) % 8  # keep every segment sublane-aligned
        pieces.append(jnp.pad(w, ((0, pad_rows), (0, LANES - fan_out))))
        offsets[name] = off
        off += fan_in + pad_rows
    return jnp.concatenate(pieces, axis=0), offsets


def _pack_biases(params):
    """One (8, 128) slab; row i holds bias i zero-padded to 128 lanes."""
    order = ["b_a1", "b_f1", "b_a2", "b_f2", "b_l1", "b_l2", "b_cls"]
    rows = [jnp.pad(params[n], ((0, 0), (0, LANES - params[n].shape[1]))) for n in order]
    slab = jnp.concatenate(rows, axis=0)
    return jnp.pad(slab, ((0, (-slab.shape[0]) % 8), (0, 0)))


def multigraph_classifier_forward(adj_a, apig_feat, adj_f, fcg_feat, params):
    """Batched late-fusion forward.

    adj_a:     (B, N_a, N_a)  normalized dense adjacency (APIG graphs)
    apig_feat: (B, N_a, apig_dim)
    adj_f:     (B, N_f, N_f)  normalized dense adjacency (FCG graphs)
    fcg_feat:  (B, N_f, fcg_dim)
    returns    (B, num_classes)
    """
    B, n_a, _ = adj_a.shape
    _, n_f, _ = adj_f.shape
    apig_dim = apig_feat.shape[-1]
    fcg_dim = fcg_feat.shape[-1]
    hidden = params["w_a1"].shape[1]
    united = params["w_l1"].shape[1]
    num_classes = params["w_cls"].shape[1]

    w_slab, w_off = _pack_weights(params)
    b_slab = _pack_biases(params)

    # VMEM residency guard: per-step inputs (double-buffered) + parameter slabs must fit
    # comfortably under the scoped VMEM limit (~32 MiB). For large graphs (N >= ~2048) the
    # dense (N, N) adjacencies must instead be tiled over node-row blocks.
    per_step_bytes = 4 * (2 * (n_a * n_a + n_a * apig_dim + n_f * n_f + n_f * fcg_dim)
                          + w_slab.size + b_slab.size + 2 * 8 * LANES)
    assert per_step_bytes < 32 * 1024 * 1024, "graphs too large for single-block VMEM residency"

    kernel = functools.partial(
        _fused_kernel,
        apig_dim=apig_dim, fcg_dim=fcg_dim, hidden=hidden, united=united,
        n_a=n_a, n_f=n_f,
        w_off=(w_off["w_a1"], w_off["w_f1"], w_off["w_a2"], w_off["w_f2"],
               w_off["w_l1"], w_off["w_l2"], w_off["w_cls"]),
    )

    grid_spec = pltpu.PrefetchScalarGridSpec(
        num_scalar_prefetch=0,
        grid=(B,),
        in_specs=[
            pl.BlockSpec((None, n_a, n_a), lambda b: (b, 0, 0)),
            pl.BlockSpec((None, n_a, apig_dim), lambda b: (b, 0, 0)),
            pl.BlockSpec((None, n_f, n_f), lambda b: (b, 0, 0)),
            pl.BlockSpec((None, n_f, fcg_dim), lambda b: (b, 0, 0)),
            pl.BlockSpec(w_slab.shape, lambda b: (0, 0)),   # constant -> fetched once
            pl.BlockSpec(b_slab.shape, lambda b: (0, 0)),   # constant -> fetched once
        ],
        out_specs=pl.BlockSpec((None, 8, LANES), lambda b: (b, 0, 0)),
    )

    # Advisory cost estimate (per-sample MXU flops x batch).
    per = (2 * n_a * apig_dim * hidden + 2 * n_a * n_a * hidden        # conv_apig1
           + 2 * n_f * fcg_dim * hidden + 2 * n_f * n_f * hidden       # conv_fcg1
           + 2 * (n_a + n_f) * hidden * united                         # linear1 (fused)
           + 2 * (n_a + n_f) * united * hidden                         # linear2 (fused)
           + 2 * n_a * hidden * hidden + 2 * n_a * n_a * hidden        # conv_apig2
           + 2 * n_f * hidden * hidden + 2 * n_f * n_f * hidden        # conv_fcg2
           + 2 * hidden * LANES)                                       # classifier
    cost = pl.CostEstimate(
        flops=int(B * per),
        transcendentals=int(B * 4),
        bytes_accessed=int(4 * (adj_a.size + apig_feat.size + adj_f.size + fcg_feat.size
                                + w_slab.size + b_slab.size + B * 8 * LANES)),
    )

    # TODO(synk): for much larger graphs, cast matmul operands to bf16 on v6e/v7x for MXU
    # throughput; at these latency-bound sizes f32 is kept for exact parity.
    out = pl.pallas_call(
        kernel,
        out_shape=jax.ShapeDtypeStruct((B, 8, LANES), jnp.float32),
        grid_spec=grid_spec,
        compiler_params=pltpu.CompilerParams(dimension_semantics=("parallel",)),
        cost_estimate=cost,
    )(adj_a, apig_feat, adj_f, fcg_feat, w_slab, b_slab)

    return out[:, 0, :num_classes]    # (B, num_classes); one row per sample, lane-sliced


# ----------------------------- glue / setup helpers -----------------------------

def _linear_params(key, fan_in, fan_out):
    """Deterministic init mimicking torch.nn.Linear default (U[-1/sqrt(fan_in), +])."""
    k_w, k_b = jax.random.split(key)
    bound = 1.0 / jnp.sqrt(jnp.asarray(fan_in, jnp.float32))
    w = jax.random.uniform(k_w, (fan_in, fan_out), jnp.float32, -bound, bound)
    b = jax.random.uniform(k_b, (1, fan_out), jnp.float32, -bound, bound)
    return w, b


def _make_params(key, united_dim, apig_dim, fcg_dim, hidden_dim, num_classes):
    keys = jax.random.split(key, 8)
    p = {}
    p["w_a1"], p["b_a1"] = _linear_params(keys[0], apig_dim, hidden_dim)
    p["w_a2"], p["b_a2"] = _linear_params(keys[1], hidden_dim, hidden_dim)
    p["w_f1"], p["b_f1"] = _linear_params(keys[2], fcg_dim, hidden_dim)
    p["w_f2"], p["b_f2"] = _linear_params(keys[3], hidden_dim, hidden_dim)
    p["w_l1"], p["b_l1"] = _linear_params(keys[4], hidden_dim, united_dim)
    p["w_l2"], p["b_l2"] = _linear_params(keys[5], united_dim, hidden_dim)
    # Attention Linear(H,1): mathematically dead in the reference (softmax over 1 scalar == 1),
    # generated only so the parameter set mirrors the PyTorch module; not passed to the kernel.
    p["w_attn"], p["b_attn"] = _linear_params(keys[6], hidden_dim, 1)
    p["w_cls"], p["b_cls"] = _linear_params(keys[7], hidden_dim, num_classes)
    return p


def _make_graph(key, n_nodes, feat_dim, edge_prob=0.3):
    """Random undirected graph -> (normalized dense adjacency, node features)."""
    k_a, k_x = jax.random.split(key)
    a = jax.random.bernoulli(k_a, edge_prob, (n_nodes, n_nodes)).astype(jnp.float32)
    a = jnp.maximum(a, a.T)                       # symmetrize
    a = jnp.maximum(a, jnp.eye(n_nodes))          # self-loops (avoid zero in-degree)
    deg = jnp.sum(a, axis=1)
    d_inv_sqrt = 1.0 / jnp.sqrt(deg)
    adj_norm = a * d_inv_sqrt[:, None] * d_inv_sqrt[None, :]   # D^-1/2 (A+I) D^-1/2
    feat = jax.random.normal(k_x, (n_nodes, feat_dim), jnp.float32)
    return adj_norm, feat


if __name__ == "__main__":
    key = jax.random.PRNGKey(0)
    k_params, k_graphs = jax.random.split(key)

    # Small shapes consistent with the module's forward; batch of graph pairs.
    batch = 4
    n_apig_nodes, n_fcg_nodes = 16, 16
    apig_dim, fcg_dim = 8, 16
    hidden_dim, united_dim, num_classes = 32, 64, 4

    params = _make_params(k_params, united_dim, apig_dim, fcg_dim,
                          hidden_dim, num_classes)

    graph_keys = jax.random.split(k_graphs, 2 * batch)
    adj_a_list, xa_list, adj_f_list, xf_list = [], [], [], []
    for i in range(batch):
        a_adj, a_feat = _make_graph(graph_keys[2 * i], n_apig_nodes, apig_dim)
        f_adj, f_feat = _make_graph(graph_keys[2 * i + 1], n_fcg_nodes, fcg_dim)
        adj_a_list.append(a_adj); xa_list.append(a_feat)
        adj_f_list.append(f_adj); xf_list.append(f_feat)
    adj_a = jnp.stack(adj_a_list)        # (B, N_a, N_a)
    apig_feat = jnp.stack(xa_list)       # (B, N_a, apig_dim)
    adj_f = jnp.stack(adj_f_list)        # (B, N_f, N_f)
    fcg_feat = jnp.stack(xf_list)        # (B, N_f, fcg_dim)

    logits = multigraph_classifier_forward(adj_a, apig_feat, adj_f, fcg_feat, params)
    logits = jax.block_until_ready(logits)

    assert logits.shape == (batch, num_classes)
    assert not bool(jnp.any(jnp.isnan(logits)))
    print("KERNEL_OK")
</pallas_src>

<mosaic_0001>
module attributes {stable_mosaic.version = 11 : i64} {
  func.func @_fused_kernel(%arg0: i32, %arg1: memref<1x16x16xf32, #tpu.memory_space<vmem>>, %arg2: memref<1x16x8xf32, #tpu.memory_space<vmem>>, %arg3: memref<1x16x16xf32, #tpu.memory_space<vmem>>, %arg4: memref<1x16x16xf32, #tpu.memory_space<vmem>>, %arg5: memref<216x128xf32, #tpu.memory_space<vmem>>, %arg6: memref<8x128xf32, #tpu.memory_space<vmem>>, %arg7: memref<1x8x128xf32, #tpu.memory_space<vmem>>) attributes {dimension_semantics = [#tpu.dimension_semantics<parallel>], iteration_bounds = array<i64: 4>, scalar_prefetch = 0 : i64, scratch_operands = 0 : i64, tpu.core_type = #tpu.core_type<tc>, window_params = [{transform_indices = @transform_0, window_bounds = array<i64: 1, 16, 16>}, {transform_indices = @transform_1, window_bounds = array<i64: 1, 16, 8>}, {transform_indices = @transform_2, window_bounds = array<i64: 1, 16, 16>}, {transform_indices = @transform_3, window_bounds = array<i64: 1, 16, 16>}, {pipeline_mode = #tpu.pipeline_mode<synchronous>, transform_indices = @transform_4, window_bounds = array<i64: 216, 128>}, {pipeline_mode = #tpu.pipeline_mode<synchronous>, transform_indices = @transform_5, window_bounds = array<i64: 8, 128>}, {transform_indices = @transform_6, window_bounds = array<i64: 1, 8, 128>}]} {
    %c0 = arith.constant 0 : index
    %c0_0 = arith.constant 0 : index
    %0 = vector.load %arg5[%c0, %c0_0] : memref<216x128xf32, #tpu.memory_space<vmem>>, vector<8x32xf32>
    %c8 = arith.constant 8 : index
    %c0_1 = arith.constant 0 : index
    %1 = vector.load %arg5[%c8, %c0_1] : memref<216x128xf32, #tpu.memory_space<vmem>>, vector<16x32xf32>
    %c24 = arith.constant 24 : index
    %c0_2 = arith.constant 0 : index
    %2 = vector.load %arg5[%c24, %c0_2] : memref<216x128xf32, #tpu.memory_space<vmem>>, vector<32x32xf32>
    %c56 = arith.constant 56 : index
    %c0_3 = arith.constant 0 : index
    %3 = vector.load %arg5[%c56, %c0_3] : memref<216x128xf32, #tpu.memory_space<vmem>>, vector<32x32xf32>
    %c88 = arith.constant 88 : index
    %c0_4 = arith.constant 0 : index
    %4 = vector.load %arg5[%c88, %c0_4] : memref<216x128xf32, #tpu.memory_space<vmem>>, vector<32x64xf32>
    %c120 = arith.constant 120 : index
    %c0_5 = arith.constant 0 : index
    %5 = vector.load %arg5[%c120, %c0_5] : memref<216x128xf32, #tpu.memory_space<vmem>>, vector<64x32xf32>
    %c184 = arith.constant 184 : index
    %c0_6 = arith.constant 0 : index
    %6 = vector.load %arg5[%c184, %c0_6] : memref<216x128xf32, #tpu.memory_space<vmem>>, vector<32x128xf32>
    %c0_7 = arith.constant 0 : index
    %c0_8 = arith.constant 0 : index
    %7 = vector.load %arg6[%c0_7, %c0_8] : memref<8x128xf32, #tpu.memory_space<vmem>>, vector<1x32xf32>
    %c1 = arith.constant 1 : index
    %c0_9 = arith.constant 0 : index
    %8 = vector.load %arg6[%c1, %c0_9] : memref<8x128xf32, #tpu.memory_space<vmem>>, vector<1x32xf32>
    %c2 = arith.constant 2 : index
    %c0_10 = arith.constant 0 : index
    %9 = vector.load %arg6[%c2, %c0_10] : memref<8x128xf32, #tpu.memory_space<vmem>>, vector<1x32xf32>
    %c3 = arith.constant 3 : index
    %c0_11 = arith.constant 0 : index
    %10 = vector.load %arg6[%c3, %c0_11] : memref<8x128xf32, #tpu.memory_space<vmem>>, vector<1x32xf32>
    %c4 = arith.constant 4 : index
    %c0_12 = arith.constant 0 : index
    %11 = vector.load %arg6[%c4, %c0_12] : memref<8x128xf32, #tpu.memory_space<vmem>>, vector<1x64xf32>
    %c5 = arith.constant 5 : index
    %c0_13 = arith.constant 0 : index
    %12 = vector.load %arg6[%c5, %c0_13] : memref<8x128xf32, #tpu.memory_space<vmem>>, vector<1x32xf32>
    %c6 = arith.constant 6 : index
    %c0_14 = arith.constant 0 : index
    %13 = vector.load %arg6[%c6, %c0_14] : memref<8x128xf32, #tpu.memory_space<vmem>>, vector<1x128xf32>
    %c0_15 = arith.constant 0 : index
    %c0_16 = arith.constant 0 : index
    %c0_17 = arith.constant 0 : index
    %14 = vector.load %arg1[%c0_15, %c0_16, %c0_17] : memref<1x16x16xf32, #tpu.memory_space<vmem>>, vector<1x16x16xf32>
    %15 = vector.shape_cast %14 : vector<1x16x16xf32> to vector<16x16xf32>
    %c0_18 = arith.constant 0 : index
    %c0_19 = arith.constant 0 : index
    %c0_20 = arith.constant 0 : index
    %16 = vector.load %arg3[%c0_18, %c0_19, %c0_20] : memref<1x16x16xf32, #tpu.memory_space<vmem>>, vector<1x16x16xf32>
    %17 = vector.shape_cast %16 : vector<1x16x16xf32> to vector<16x16xf32>
    %c0_21 = arith.constant 0 : index
    %c0_22 = arith.constant 0 : index
    %c0_23 = arith.constant 0 : index
    %18 = vector.load %arg2[%c0_21, %c0_22, %c0_23] : memref<1x16x8xf32, #tpu.memory_space<vmem>>, vector<1x16x8xf32>
    %19 = vector.shape_cast %18 : vector<1x16x8xf32> to vector<16x8xf32>
    %cst = arith.constant dense<0.000000e+00> : vector<16x32xf32>
    %20 = tpu.matmul %19, %0, %cst {dimension_numbers = #tpu.dot_dimension_numbers<[1], [0], [0], [1], [0, 0, 1, 1], [], []>} : vector<16x8xf32>, vector<8x32xf32>, vector<16x32xf32> -> vector<16x32xf32>
    %cst_24 = arith.constant dense<0.000000e+00> : vector<16x32xf32>
    %21 = tpu.matmul %15, %20, %cst_24 {dimension_numbers = #tpu.dot_dimension_numbers<[1], [0], [0], [1], [0, 0, 1, 1], [], []>} : vector<16x16xf32>, vector<16x32xf32>, vector<16x32xf32> -> vector<16x32xf32>
    %22 = vector.broadcast %7 : vector<1x32xf32> to vector<16x32xf32>
    %23 = arith.addf %21, %22 : vector<16x32xf32>
    %cst_25 = arith.constant 0.000000e+00 : f32
    %24 = vector.broadcast %cst_25 : f32 to vector<16x32xf32>
    %25 = arith.maximumf %23, %24 : vector<16x32xf32>
    %c0_26 = arith.constant 0 : index
    %c0_27 = arith.constant 0 : index
    %c0_28 = arith.constant 0 : index
    %26 = vector.load %arg4[%c0_26, %c0_27, %c0_28] : memref<1x16x16xf32, #tpu.memory_space<vmem>>, vector<1x16x16xf32>
    %27 = vector.shape_cast %26 : vector<1x16x16xf32> to vector<16x16xf32>
    %cst_29 = arith.constant dense<0.000000e+00> : vector<16x32xf32>
    %28 = tpu.matmul %27, %1, %cst_29 {dimension_numbers = #tpu.dot_dimension_numbers<[1], [0], [0], [1], [0, 0, 1, 1], [], []>} : vector<16x16xf32>, vector<16x32xf32>, vector<16x32xf32> -> vector<16x32xf32>
    %cst_30 = arith.constant dense<0.000000e+00> : vector<16x32xf32>
    %29 = tpu.matmul %17, %28, %cst_30 {dimension_numbers = #tpu.dot_dimension_numbers<[1], [0], [0], [1], [0, 0, 1, 1], [], []>} : vector<16x16xf32>, vector<16x32xf32>, vector<16x32xf32> -> vector<16x32xf32>
    %30 = vector.broadcast %8 : vector<1x32xf32> to vector<16x32xf32>
    %31 = arith.addf %29, %30 : vector<16x32xf32>
    %cst_31 = arith.constant 0.000000e+00 : f32
    %32 = vector.broadcast %cst_31 : f32 to vector<16x32xf32>
    %33 = arith.maximumf %31, %32 : vector<16x32xf32>
    %34 = tpu.concatenate %25, %33 in 0 : vector<16x32xf32>, vector<16x32xf32> -> vector<32x32xf32>
    %cst_32 = arith.constant dense<0.000000e+00> : vector<32x64xf32>
    %35 = tpu.matmul %34, %4, %cst_32 {dimension_numbers = #tpu.dot_dimension_numbers<[1], [0], [0], [1], [0, 0, 1, 1], [], []>} : vector<32x32xf32>, vector<32x64xf32>, vector<32x64xf32> -> vector<32x64xf32>
    %36 = vector.broadcast %11 : vector<1x64xf32> to vector<32x64xf32>
    %37 = arith.addf %35, %36 : vector<32x64xf32>
    %38 = vector.extract_strided_slice %37 {offsets = [0, 0], sizes = [16, 64], strides = [1, 1]} : vector<32x64xf32> to vector<16x64xf32>
    %39 = vector.extract_strided_slice %37 {offsets = [16, 0], sizes = [16, 64], strides = [1, 1]} : vector<32x64xf32> to vector<16x64xf32>
    %cst_33 = arith.constant dense<0.000000e+00> : vector<64xf32>
    %40 = vector.multi_reduction <add>, %38, %cst_33 [0] : vector<16x64xf32> to vector<64xf32>
    %41 = vector.shape_cast %40 : vector<64xf32> to vector<1x64xf32>
    %cst_34 = arith.constant dense<0.000000e+00> : vector<64xf32>
    %42 = vector.multi_reduction <add>, %39, %cst_34 [0] : vector<16x64xf32> to vector<64xf32>
    %43 = vector.shape_cast %42 : vector<64xf32> to vector<1x64xf32>
    %cst_35 = arith.constant 1.000000e-01 : f32
    %44 = vector.broadcast %cst_35 : f32 to vector<1x64xf32>
    %45 = arith.mulf %44, %43 : vector<1x64xf32>
    %46 = vector.broadcast %45 : vector<1x64xf32> to vector<16x64xf32>
    %47 = arith.addf %38, %46 : vector<16x64xf32>
    %cst_36 = arith.constant 1.000000e-01 : f32
    %48 = vector.broadcast %cst_36 : f32 to vector<1x64xf32>
    %49 = arith.mulf %48, %41 : vector<1x64xf32>
    %50 = vector.broadcast %49 : vector<1x64xf32> to vector<16x64xf32>
    %51 = arith.addf %39, %50 : vector<16x64xf32>
    %52 = tpu.concatenate %47, %51 in 0 : vector<16x64xf32>, vector<16x64xf32> -> vector<32x64xf32>
    %cst_37 = arith.constant dense<0.000000e+00> : vector<32x32xf32>
    %53 = tpu.matmul %52, %5, %cst_37 {dimension_numbers = #tpu.dot_dimension_numbers<[1], [0], [0], [1], [0, 0, 1, 1], [], []>} : vector<32x64xf32>, vector<64x32xf32>, vector<32x32xf32> -> vector<32x32xf32>
    %54 = vector.broadcast %12 : vector<1x32xf32> to vector<32x32xf32>
    %55 = arith.addf %53, %54 : vector<32x32xf32>
    %56 = vector.extract_strided_slice %55 {offsets = [0, 0], sizes = [16, 32], strides = [1, 1]} : vector<32x32xf32> to vector<16x32xf32>
    %57 = vector.extract_strided_slice %55 {offsets = [16, 0], sizes = [16, 32], strides = [1, 1]} : vector<32x32xf32> to vector<16x32xf32>
    %cst_38 = arith.constant dense<0.000000e+00> : vector<16x32xf32>
    %58 = tpu.matmul %56, %2, %cst_38 {dimension_numbers = #tpu.dot_dimension_numbers<[1], [0], [0], [1], [0, 0, 1, 1], [], []>} : vector<16x32xf32>, vector<32x32xf32>, vector<16x32xf32> -> vector<16x32xf32>
    %cst_39 = arith.constant dense<0.000000e+00> : vector<16x32xf32>
    %59 = tpu.matmul %15, %58, %cst_39 {dimension_numbers = #tpu.dot_dimension_numbers<[1], [0], [0], [1], [0, 0, 1, 1], [], []>} : vector<16x16xf32>, vector<16x32xf32>, vector<16x32xf32> -> vector<16x32xf32>
    %60 = vector.broadcast %9 : vector<1x32xf32> to vector<16x32xf32>
    %61 = arith.addf %59, %60 : vector<16x32xf32>
    %cst_40 = arith.constant 0.000000e+00 : f32
    %62 = vector.broadcast %cst_40 : f32 to vector<16x32xf32>
    %63 = arith.maximumf %61, %62 : vector<16x32xf32>
    %cst_41 = arith.constant dense<0.000000e+00> : vector<16x32xf32>
    %64 = tpu.matmul %57, %3, %cst_41 {dimension_numbers = #tpu.dot_dimension_numbers<[1], [0], [0], [1], [0, 0, 1, 1], [], []>} : vector<16x32xf32>, vector<32x32xf32>, vector<16x32xf32> -> vector<16x32xf32>
    %cst_42 = arith.constant dense<0.000000e+00> : vector<16x32xf32>
    %65 = tpu.matmul %17, %64, %cst_42 {dimension_numbers = #tpu.dot_dimension_numbers<[1], [0], [0], [1], [0, 0, 1, 1], [], []>} : vector<16x16xf32>, vector<16x32xf32>, vector<16x32xf32> -> vector<16x32xf32>
    %66 = vector.broadcast %10 : vector<1x32xf32> to vector<16x32xf32>
    %67 = arith.addf %65, %66 : vector<16x32xf32>
    %cst_43 = arith.constant 0.000000e+00 : f32
    %68 = vector.broadcast %cst_43 : f32 to vector<16x32xf32>
    %69 = arith.maximumf %67, %68 : vector<16x32xf32>
    %cst_44 = arith.constant dense<0.000000e+00> : vector<32xf32>
    %70 = vector.multi_reduction <add>, %63, %cst_44 [0] : vector<16x32xf32> to vector<32xf32>
    %71 = vector.shape_cast %70 : vector<32xf32> to vector<1x32xf32>
    %cst_45 = arith.constant 1.600000e+01 : f32
    %72 = vector.broadcast %cst_45 : f32 to vector<1x32xf32>
    %73 = arith.divf %71, %72 : vector<1x32xf32>
    %cst_46 = arith.constant dense<0xFF800000> : vector<32xf32>
    %74 = vector.multi_reduction <maximumf>, %69, %cst_46 [0] : vector<16x32xf32> to vector<32xf32>
    %75 = vector.shape_cast %74 : vector<32xf32> to vector<1x32xf32>
    %76 = tpu.concatenate %73, %75 in 0 : vector<1x32xf32>, vector<1x32xf32> -> vector<2x32xf32>
    %cst_47 = arith.constant dense<0.000000e+00> : vector<2xf32>
    %77 = vector.multi_reduction <add>, %76, %cst_47 [1] : vector<2x32xf32> to vector<2xf32>
    %78 = vector.shape_cast %77 : vector<2xf32> to vector<2x1xf32>
    %cst_48 = arith.constant 3.200000e+01 : f32
    %79 = vector.broadcast %cst_48 : f32 to vector<2x1xf32>
    %80 = arith.divf %78, %79 : vector<2x1xf32>
    %81 = vector.broadcast %80 : vector<2x1xf32> to vector<2x32xf32>
    %82 = arith.subf %76, %81 : vector<2x32xf32>
    %83 = arith.mulf %82, %82 : vector<2x32xf32>
    %cst_49 = arith.constant dense<0.000000e+00> : vector<2xf32>
    %84 = vector.multi_reduction <add>, %83, %cst_49 [1] : vector<2x32xf32> to vector<2xf32>
    %85 = vector.shape_cast %84 : vector<2xf32> to vector<2x1xf32>
    %cst_50 = arith.constant 0.0322580636 : f32
    %86 = vector.broadcast %cst_50 : f32 to vector<2x1xf32>
    %87 = arith.mulf %85, %86 : vector<2x1xf32>
    %88 = vector.broadcast %80 : vector<2x1xf32> to vector<2x32xf32>
    %89 = arith.subf %76, %88 : vector<2x32xf32>
    %90 = math.rsqrt %87 : vector<2x1xf32>
    %91 = vector.broadcast %90 : vector<2x1xf32> to vector<2x32xf32>
    %92 = arith.mulf %89, %91 : vector<2x32xf32>
    %cst_51 = arith.constant dense<0x7F800000> : vector<2xf32>
    %93 = vector.multi_reduction <minimumf>, %92, %cst_51 [1] : vector<2x32xf32> to vector<2xf32>
    %94 = vector.shape_cast %93 : vector<2xf32> to vector<2x1xf32>
    %cst_52 = arith.constant dense<0xFF800000> : vector<2xf32>
    %95 = vector.multi_reduction <maximumf>, %92, %cst_52 [1] : vector<2x32xf32> to vector<2xf32>
    %96 = vector.shape_cast %95 : vector<2xf32> to vector<2x1xf32>
    %97 = vector.broadcast %94 : vector<2x1xf32> to vector<2x32xf32>
    %98 = arith.subf %92, %97 : vector<2x32xf32>
    %99 = arith.subf %96, %94 : vector<2x1xf32>
    %100 = tpu.reciprocal %99 {approx = true} : vector<2x1xf32> -> vector<2x1xf32>
    %101 = vector.broadcast %100 : vector<2x1xf32> to vector<2x32xf32>
    %102 = arith.mulf %98, %101 : vector<2x32xf32>
    %103 = vector.extract_strided_slice %102 {offsets = [0, 0], sizes = [1, 32], strides = [1, 1]} : vector<2x32xf32> to vector<1x32xf32>
    %104 = vector.extract_strided_slice %102 {offsets = [1, 0], sizes = [1, 32], strides = [1, 1]} : vector<2x32xf32> to vector<1x32xf32>
    %105 = arith.addf %103, %104 : vector<1x32xf32>
    %cst_53 = arith.constant dense<0.000000e+00> : vector<1x128xf32>
    %106 = tpu.matmul %105, %6, %cst_53 {dimension_numbers = #tpu.dot_dimension_numbers<[1], [0], [0], [1], [0, 0, 1, 1], [], []>} : vector<1x32xf32>, vector<32x128xf32>, vector<1x128xf32> -> vector<1x128xf32>
    %107 = arith.addf %106, %13 : vector<1x128xf32>
    %108 = vector.shape_cast %107 : vector<1x128xf32> to vector<1x128xf32>
    %109 = vector.broadcast %108 : vector<1x128xf32> to vector<8x128xf32>
    %c0_54 = arith.constant 0 : index
    %c0_55 = arith.constant 0 : index
    %c0_56 = arith.constant 0 : index
    %110 = vector.load %arg7[%c0_54, %c0_55, %c0_56] : memref<1x8x128xf32, #tpu.memory_space<vmem>>, vector<1x8x128xf32>
    %111 = vector.shape_cast %110 : vector<1x8x128xf32> to vector<8x128xf32>
    %112 = vector.shape_cast %109 : vector<8x128xf32> to vector<1x8x128xf32>
    tpu.vector_store %arg7[%c0_54, %c0_55, %c0_56], %112 {strides = array<i32>} : memref<1x8x128xf32, #tpu.memory_space<vmem>>, vector<1x8x128xf32>,
    return
  }
  func.func @transform_0(%arg0: i32) -> (i32, i32, i32) {
    %c0_i32 = arith.constant 0 : i32
    %c0_i32_0 = arith.constant 0 : i32
    %c0_i32_1 = arith.constant 0 : i32
    return %arg0, %c0_i32, %c0_i32_0 : i32, i32, i32
  }
  func.func @transform_1(%arg0: i32) -> (i32, i32, i32) {
    %c0_i32 = arith.constant 0 : i32
    %c0_i32_0 = arith.constant 0 : i32
    %c0_i32_1 = arith.constant 0 : i32
    return %arg0, %c0_i32, %c0_i32_0 : i32, i32, i32
  }
  func.func @transform_2(%arg0: i32) -> (i32, i32, i32) {
    %c0_i32 = arith.constant 0 : i32
    %c0_i32_0 = arith.constant 0 : i32
    %c0_i32_1 = arith.constant 0 : i32
    return %arg0, %c0_i32, %c0_i32_0 : i32, i32, i32
  }
  func.func @transform_3(%arg0: i32) -> (i32, i32, i32) {
    %c0_i32 = arith.constant 0 : i32
    %c0_i32_0 = arith.constant 0 : i32
    %c0_i32_1 = arith.constant 0 : i32
    return %arg0, %c0_i32, %c0_i32_0 : i32, i32, i32
  }
  func.func @transform_4(%arg0: i32) -> (i32, i32) {
    %c0_i32 = arith.constant 0 : i32
    %c0_i32_0 = arith.constant 0 : i32
    %c0_i32_1 = arith.constant 0 : i32
    return %c0_i32, %c0_i32_0 : i32, i32
  }
  func.func @transform_5(%arg0: i32) -> (i32, i32) {
    %c0_i32 = arith.constant 0 : i32
    %c0_i32_0 = arith.constant 0 : i32
    %c0_i32_1 = arith.constant 0 : i32
    return %c0_i32, %c0_i32_0 : i32, i32
  }
  func.func @transform_6(%arg0: i32) -> (i32, i32, i32) {
    %c0_i32 = arith.constant 0 : i32
    %c0_i32_0 = arith.constant 0 : i32
    %c0_i32_1 = arith.constant 0 : i32
    return %arg0, %c0_i32, %c0_i32_0 : i32, i32, i32
  }
}

</mosaic_0001>

<bundles_post_ra>
// kernel: tpu_custom_call.1
= control target key start
LH: loop header
LB: loop body
LE: loop exit
PB: predicated region body
PF: predicated region fallthrough
CT: control target
= control target key end

     0   :  { %s2360_s0 = inlined_call_operand.vmem [shape: f32[4,16,16], index: 0, kind: input, shape index: {}]   ;;  %s2361_s1 = inlined_call_operand.vmem [shape: f32[4,16,8], index: 1, kind: input, shape index: {}]   ;;  %s2362_s2 = inlined_call_operand.hbm [shape: f32[4,16,16], index: 2, kind: input, shape index: {}]   ;;  %s2363_s3 = inlined_call_operand.hbm [shape: f32[4,16,16], index: 3, kind: input, shape index: {}]   ;;  %s2364_s4 = inlined_call_operand.hbm [shape: f32[216,128], index: 4, kind: input, shape index: {}]   ;;  %s2365_s5 = inlined_call_operand.vmem [shape: f32[8,128], index: 5, kind: input, shape index: {}]   ;;  %s2366_s6 = inlined_call_operand.hbm [shape: f32[4,8,128], index: 6, kind: output, shape index: {}]  }
   0x1   :  { %2377 = sst [smem:[#allocation16_spill]] %s2362_s2 }
   0x2   :  { %2378 = sst [smem:[#allocation17_spill]] %s2364_s4 }
   0x3   :  { %11 = vsyncpa [#allocation3], 0 }
   0x4   :  { %13 = vsyncpa [#allocation3 + $0x1], 0 }
   0x5   :  { %14 = vsyncpa [#allocation6], 0 }
   0x6   :  { %16 = vsyncpa [#allocation6 + $0x1], 0 }
   0x7   :  { %17 = vsyncpa [#allocation4], 0 }
   0x8   :  { %19 = vsyncpa [#allocation4 + $0x1], 0  ;;  %s2060_s21 = smov 0   ;;  %s2062_s22 = smov 0  }
   0x9   :  { %s2064_s23 = smov 0   ;;  %s2066_s24 = smov 0  }
   0xa LB: > { %2379 = sst [smem:[#allocation13_spill]] %s2011_s23  ;;  %s2081_s25 = sadd.s32 4294967295, %s2015_s24   ;;  %s2015_s24 = sphi %s2066_s24, %s2398_s24   ;;  %s2011_s23 = sphi %s2064_s23, %s2400_s23   ;;  %s2007_s22 = sphi %s2062_s22, %s2402_s22   ;;  %s2003_s21 = sphi %s2060_s21, %s2401_s21  }
   0xb   : > { %s1564_s26 = sadd.s32 4294967294, %s2015_s24   ;;  %p97_p0 = scmp.ne.s32.totalorder %s2007_s22, %s2003_s21 }
   0xc   : > { %p2372_p1 = scmp.eq.s32.totalorder %s2081_s25, 0  ;;  %p195_p3 = scmp.eq.s32.totalorder %s1564_s26, 3 }
   0xd   : > { %p1565_p5 = scmp.ge.s32.totalorder %s2015_s24, 1  ;;  %p202_p7 = scmp.lt.s32.totalorder %s2015_s24, 5 }
   0xe   : > { %p2090_p4 = por %p2372_p1, %p97_p0  ;;  %p2095_p6 = por %p195_p3, %p97_p0 }
   0xf   : > { %p2100_p8 = pnand %p1565_p5, %p202_p7  ;;  %s2017_s30 = smov [#allocation7]  }
  0x10   : > { %s2380_s27 = scalar_select %p2090_p4, 1, 0 }
  0x11   : > { %s2381_s28 = scalar_select %p2095_p6, 1, 0 }
  0x12   : > { %s214_s7 = sshll.u32 %s2017_s30, 4  ;;  %p1801_p9 = pneg %p2100_p8  ;;  %s215_s7 = int_to_ptr.vmem [resolvable:$true] %s214_s7 }
  0x13   : > { %s2113_s9 = sadd.s32 1, %s2015_s24   ;;  %s84_s10 = sadd.s32 1, %s2011_s23 }
  0x14   : > { %p2108_p10 = pnand %p1801_p9, %p2372_p1  ;;  %2384 = sst [smem:[#allocation14_spill]] %s2113_s9 }
  0x15   : > { %s81_s11 = ssub.s32 %s2015_s24, %s2113_s9  ;;  %s1872_s12 = scalar_lea.vmem %s215_s7, 3456 }
  0x16   : > { %p1863_p11 = pneg %p2108_p10  ;;  %p1873_p12 = scmp.ne.s32.totalorder %s215_s7, %s1872_s12 }
  0x17   : > { %p1880_p3 = scmp.lt.s32.totalorder %s215_s7, %s215_s7  ;;  %p1881_p5 = scmp.lt.s32.totalorder %s1872_s12, %s1872_s12 }
  0x18   : > { %p1875_p13 = pnand %p1873_p12, %p1863_p11 }
  0x19   : > { %p1882_p7 = por %p1881_p5, %p1880_p3 }
  0x1a   : > { %p1876_p0 = pneg %p1875_p13 }
  0x1c   : > { %p1883_p2 = pnand %p1882_p7, %p1876_p0 }
  0x1e   : > { %1886 = shalt.err (!%p1883_p2)
}
  0x1f   : > { %s2367_s13 = smov 128   ;;  %s2369_s14 = smov 8  }
  0x20   : > { %s2385_s4 = sld [smem:[#allocation17_spill]]  ;;  %p82_p2 = scmp.eq.s32.totalorder %s81_s11, 0 }
  0x21   : > { %p91_p9 = scmp.ne.s32.totalorder %s2011_s23, %s2007_s22  ;;  %p92_p11 = scmp.eq.s32.totalorder %s2015_s24, 0 }
  0x22   : > { %p1817_p12 = scmp.lt.s32.totalorder %s2015_s24, 4  ;;  %p2387_p0 = scmp.eq.s32.totalorder %s2081_s25, 3 }
  0x23   : > { %s2133_s17 = scalar_select %p82_p2, %s2011_s23, %s84_s10  }
  0x24   : > { %p93_p13 = por %p92_p11, %p91_p9  ;;  %p2137_p3 = por %p2387_p0, %p91_p9 }
  0x25   : > { %2386 = sst [smem:[#allocation15_spill]] %s2133_s17  ;;  %s247_s19 = sand.u32 1, %s2011_s23  }
  0x26   : > { %1804 = dma.hbm_to_vmem [thread:$0]  (!%p2108_p10), %s2385_s4, 3456, %s215_s7, [#allocation6], %s2367_s13, %s2367_s13, %s2369_s14  }
  0x27   : > { %s2388_s18 = scalar_select %p2137_p3, 1, 0 }
  0x28   : > { %s1618_s20 = sshll.u32 %s2015_s24, 8  ;;  %s2143_s26 = sshll.u32 %s247_s19, 4 }
  0x29   : > { %s2389_s2 = sld [smem:[#allocation16_spill]]  ;;  %s251_s10 = scalar_lea.vmem [#allocation2], %s2143_s26 }
  0x2a   : > { %s258_s11 = sshll.u32 %s251_s10, 4  ;;  %p2151_p10 = pnand %p1817_p12, %p93_p13  ;;  %s2155_s11 = int_to_ptr.vmem [resolvable:$true] %s258_s11 }
  0x2b   : > { %s2160_s30 = scalar_lea.hbm %s2363_s3, %s1618_s20  ;;  %s2162_s8 = scalar_lea.sflag [#allocation3], %s247_s19 }
  0x2c   : > { %p1889_p7 = pneg %p2151_p10 }
  0x2f   : > { %s2148_s7 = scalar_lea.hbm %s2389_s2, %s1618_s20  ;;  %s1892_s4 = scalar_lea.hbm %s2389_s2, 1024 }
  0x30   : > { %s1887_s13 = scalar_lea.hbm %s2148_s7, 256  ;;  %p1893_p11 = scmp.lt.s32.totalorder %s2148_s7, %s2389_s2 }
  0x31   : > { %p1888_p5 = scmp.ne.s32.totalorder %s2148_s7, %s1887_s13  ;;  %p1894_p12 = scmp.lt.s32.totalorder %s1892_s4, %s1887_s13 }
  0x33   : > { %p1890_p2 = pnand %p1889_p7, %p1888_p5  ;;  %p1895_p13 = por %p1894_p12, %p1893_p11 }
  0x35   : > { %p1891_p9 = pneg %p1890_p2 }
  0x37   : > { %p1896_p0 = pnand %p1895_p13, %p1891_p9 }
  0x39   : > { %1899 = shalt.err (!%p1896_p0)
}
  0x3a   : > { %s1900_s19 = scalar_lea.vmem %s2155_s11, 256  ;;  %s2020_s14 = smov [#allocation2]  }
  0x3b   : > { %p1901_p1 = scmp.ne.s32.totalorder %s2155_s11, %s1900_s19  ;;  %s1905_s20 = sshll.u32 %s2020_s14, 4  ;;  %s1906_s20 = int_to_ptr.vmem [resolvable:$false] %s1905_s20 }
  0x3c   : > { %s1907_s15 = scalar_lea.vmem %s1906_s20, 512  ;;  %p1908_p6 = scmp.lt.s32.totalorder %s2155_s11, %s1906_s20 }
  0x3d   : > { %p1903_p5 = pnand %p1901_p1, %p1889_p7  ;;  %p1909_p3 = scmp.lt.s32.totalorder %s1907_s15, %s1900_s19 }
  0x3f   : > { %p1904_p2 = pneg %p1903_p5  ;;  %p1910_p4 = por %p1909_p3, %p1908_p6 }
  0x41   : > { %p1911_p11 = pnand %p1910_p4, %p1904_p2 }
  0x43   : > { %1914 = shalt.err (!%p1911_p11)
}
  0x44   : > { %s2391_s4 = smov 8   ;;  %s2392_s23 = smov 128  }
  0x45   : > { %1808 = dma.hbm_to_vmem [thread:$0]  (!%p2151_p10), %s2148_s7, 256, %s2155_s11, %s2162_s8, %s2392_s23, %s2392_s23, %s2391_s4  }
  0x46   : > { %s272_s13 = scalar_lea.vmem [#allocation5], %s2143_s26  ;;  %s268_s16 = sand.u32 1, %s2015_s24  }
  0x47   : > { %s279_s17 = sshll.u32 %s272_s13, 4  ;;  %s269_s10 = scalar_lea.sflag [#allocation6], %s268_s16  ;;  %s2194_s17 = int_to_ptr.vmem [resolvable:$true] %s279_s17 }
  0x48   : > { %s1915_s19 = scalar_lea.hbm %s2160_s30, 256  ;;  %s1920_s15 = scalar_lea.hbm %s2363_s3, 1024 }
  0x49   : > { %p1916_p1 = scmp.ne.s32.totalorder %s2160_s30, %s1915_s19  ;;  %p1921_p3 = scmp.lt.s32.totalorder %s2160_s30, %s2363_s3 }
  0x4a   : > { %p1922_p9 = scmp.lt.s32.totalorder %s1920_s15, %s1915_s19 }
  0x4b   : > { %p1918_p4 = pnand %p1916_p1, %p1889_p7 }
  0x4c   : > { %p1923_p12 = por %p1922_p9, %p1921_p3 }
  0x4d   : > { %p1919_p6 = pneg %p1918_p4 }
  0x4f   : > { %p1924_p13 = pnand %p1923_p12, %p1919_p6 }
  0x51   : > { %1927 = shalt.err (!%p1924_p13)
}
  0x52   : > { %s1928_s26 = scalar_lea.vmem %s2194_s17, 256  ;;  %s2021_s7 = smov [#allocation5]  }
  0x53   : > { %p1929_p0 = scmp.ne.s32.totalorder %s2194_s17, %s1928_s26  ;;  %s1933_s11 = sshll.u32 %s2021_s7, 4  ;;  %s1934_s11 = int_to_ptr.vmem [resolvable:$false] %s1933_s11 }
  0x54   : > { %s1935_s8 = scalar_lea.vmem %s1934_s11, 512  ;;  %p1936_p11 = scmp.lt.s32.totalorder %s2194_s17, %s1934_s11 }
  0x55   : > { %p1931_p5 = pnand %p1929_p0, %p1889_p7  ;;  %p1937_p1 = scmp.lt.s32.totalorder %s1935_s8, %s1928_s26 }
  0x57   : > { %p1932_p2 = pneg %p1931_p5  ;;  %p1938_p4 = por %p1937_p1, %p1936_p11 }
  0x59   : > { %p1939_p3 = pnand %p1938_p4, %p1932_p2 }
  0x5b   : > { %1942 = shalt.err (!%p1939_p3)
}
  0x5c   : > { %1811 = dma.hbm_to_vmem [thread:$0]  (!%p2151_p10), %s2160_s30, 256, %s2194_s17, %s269_s10, %s2392_s23, %s2392_s23, %s2391_s4  }
  0x5d   : > { %291 = sbr.rel (%p2100_p8) target bundleno = 2022 (0x7e6), region = 44  ;;  %s2224_s2 = sand.u32 (!%p2100_p8), 1, %s2007_s22  }
  0x5e   : > { %s1575_s9 = sshll.u32 (!%p2100_p8), %s2224_s2, 4  ;;  %s294_s13 = scalar_lea.sflag (!%p2100_p8), [#allocation3], %s2224_s2 }
  0x5f   : > { %s2228_s16 = scalar_lea.vmem (!%p2100_p8), [#allocation2], %s1575_s9  ;;  %p2393_p7 = scmp.ne.s32.totalorder (!%p2100_p8), %s2380_s27, 0 }
  0x62   : > { %1986 = dma.done.wait (%p2393_p7), %s294_s13, 256  }
  0x63   : > { %1988 = vsyncadd (%p2393_p7), %s294_s13, 4294967040  ;;  %s302_s12 = sand.u32 1, %s2081_s25   ;;  %s306_s30 = scalar_lea.vmem [#allocation5], %s1575_s9 }
  0x64   : > { %s303_s29 = scalar_lea.sflag [#allocation6], %s302_s12 }
  0x65   : > { %1990 = dma.done.wait (%p2393_p7), %s303_s29, 256  }
  0x66   : > { %1992 = vsyncadd (%p2393_p7), %s303_s29, 4294967040  ;;  %p2394_p8 = scmp.eq.s32.totalorder %s2081_s25, 0 }
  0x68   : > { %1994 = dma.done.wait (%p2394_p8), [#allocation6], 3456   ;;  %p2395_p10 = pmov %p2394_p8 }
  0x69   : > { %p354_p6 = scmp.lt.s32.totalorder %s2081_s25, 3  ;;  %vm404_vm0 = vcmask 64512   ;;  %v364_v0 = vld [vmem:[#allocation7] sm:$0xff]  ;;  %v366_v1 = vld [vmem:[#allocation7 + $0x10] sm:$0xff]  ;;  %v365_v4 = vld [vmem:[#allocation7 + $0x8] sm:$0xff]  ;;  %vm490_vm1 = vcmask 130048  }
  0x6a   : > { %1996 = vsyncadd (%p2395_p10), [#allocation6], 4294963840  ;;  %1682 = vmatprep.subr.mxu1 %v364_v0  ;;  %1694 = vmatprep.subr.mxu0 %v366_v1  ;;  %v574_v5 = vld [vmem:[%s306_s30] sm:$0xff]  ;;  %v575_v6 = vld [vmem:[%s306_s30 + $0x8] sm:$0xff]  ;;  %vm748_vm2 = vcmask 261120   ;;  %vm846_vm3 = vcmask 523264  }
  0x6b   : > { %s355_s4 = scalar_select %p354_p6, %s2081_s25, 3  ;;  %1683 = vmatpush3.msra.mxu1 %v364_v0  ;;  %1695 = vmatpush3.msra.mxu0 %v366_v1  ;;  %v2260_v12 = vld [vmem:[%s2228_s16] sm:$0xff]  ;;  %v2267_v14 = vld [vmem:[%s2228_s16 + $0x8] sm:$0xff]  ;;  %vm1316_vm4 = vcmask 1040384   ;;  %vm1318_vm5 = vcmask 254976   ;;  %vm2023_vm6 = vmmov 0  }
  0x6c   : > { %1696 = vmatprep.subr.mxu0 %v365_v4  ;;  %1698 = vmatprep.mubr.msk.f32.mxu0 %vm490_vm1, %v574_v5  ;;  %v378_v15 = vld [vmem:[#allocation7 + $0x70] sm:$0xff]  ;;  %v377_v16 = vld [vmem:[#allocation7 + $0x68] sm:$0xff]  ;;  %v376_v17 = vld [vmem:[#allocation7 + $0x60] sm:$0xff]  ;;  %s1425_s7 = scalar_lea.sflag [#allocation4], %s2224_s2  ;;  %p2396_p12 = scmp.ne.s32.totalorder %s2388_s18, 0 }
  0x6d   : > { %s1620_s23 = sshll.u32 %s355_s4, 4  ;;  %1697 = vmatpush3.msra.mxu0 %v365_v4  ;;  %v375_v18 = vld [vmem:[#allocation7 + $0x58] sm:$0xff]  ;;  %v1585_v19 = vld [vmem:[%s2365_s5] ss:$0 sm:$0xff]  ;;  %v1590_v24 = vld [vmem:[%s2365_s5 + $0x1] ss:$0 sm:$0xff] }
  0x6e   : > { %s363_s19 = scalar_lea.vmem %s2361_s1, %s1620_s23  ;;  %1699 = vmatmul.mubr.msk.f32.vlgmr.msra.gmra.mxu0 %vm490_vm1, %v575_v6  ;;  %s358_s20 = scalar_lea.vmem %s2360_s0, %s1620_s23  ;;  %1708 = vmatprep.subr.mxu0 %v378_v15  ;;  %v386_v33 = vld [vmem:[#allocation7 + $0xb0] sm:$0xff]  ;;  %v385_v34 = vld [vmem:[#allocation7 + $0xa8] sm:$0xff]  ;;  %v384_v35 = vld [vmem:[#allocation7 + $0xa0] sm:$0xff] }
  0x6f   : > { %v402_v2 = vld [vmem:[%s363_s19] sm:$0xff]  ;;  %v403_v3 = vld [vmem:[%s363_s19 + $0x8] sm:$0xff]  ;;  %1709 = vmatpush3.msra.mxu0 %v378_v15  ;;  %v383_v36 = vld [vmem:[#allocation7 + $0x98] sm:$0xff]  ;;  %s1578_s23 = sshll.u32 %s2224_s2, 3  ;;  %s1615_s19 = sshll.u32 %s2081_s25, 7 }
  0x70   : > { %1684 = vmatprep.mubr.msk.f32.mxu1 %vm404_vm0, %v402_v2  ;;  %v2253_v7 = vld [vmem:[%s358_s20] sm:$0xff]  ;;  %v2257_v9 = vld [vmem:[%s358_s20 + $0x8] sm:$0xff]  ;;  %1710 = vmatprep.subr.mxu0 %v377_v16  ;;  %v382_v37 = vld [vmem:[#allocation7 + $0x90] sm:$0xff]  ;;  %s353_s27 = scalar_lea.vmem [#allocation8], %s1578_s23  ;;  %s1436_s26 = scalar_lea.hbm %s2366_s6, %s1615_s19 }
  0x71   : > { %1685 = vmatmul.mubr.msk.f32.vlgmr.msra.gmra.mxu1 %vm404_vm0, %v403_v3  ;;  %1711 = vmatpush3.msra.mxu0 %v377_v16  ;;  %v381_v38 = vld [vmem:[#allocation7 + $0x88] sm:$0xff]  ;;  %v380_v39 = vld [vmem:[#allocation7 + $0x80] sm:$0xff]  ;;  %v379_v40 = vld [vmem:[#allocation7 + $0x78] sm:$0xff]  ;;  %s1438_s14 = sshll.u32 %s353_s27, 4  ;;  %s2024_s8 = smov [#allocation8]   ;;  %s1439_s14 = int_to_ptr.vmem [resolvable:$true] %s1438_s14 }
  0x72   : > { %1691 = vmatprep.mubr.msk.f32.mxu1 %vm490_vm1, %v2253_v7  ;;  %1712 = vmatprep.subr.mxu0 %v376_v17  ;;  %v370_v41 = vld [vmem:[#allocation7 + $0x30] sm:$0xff]  ;;  %v1593_v42 = vld [vmem:[%s2365_s5 + $0x4] ss:$0 sm:$0xff]  ;;  %v369_v15 = vld [vmem:[#allocation7 + $0x28] sm:$0xff]  ;;  %s1943_s11 = scalar_lea.vmem %s1439_s14, 128  ;;  %s1947_s9 = sshll.u32 %s2024_s8, 4  ;;  %s1948_s9 = int_to_ptr.vmem [resolvable:$false] %s1947_s9 }
  0x73   : > { %1713 = vmatpush3.msra.mxu0 %v376_v17  ;;  %v368_v16 = vld [vmem:[#allocation7 + $0x20] sm:$0xff]  ;;  %v374_v17 = vld [vmem:[#allocation7 + $0x50] sm:$0xff]  ;;  %p1944_p9 = scmp.ne.s32.totalorder %s1439_s14, %s1943_s11  ;;  %s1949_s25 = scalar_lea.vmem %s1948_s9, 256 }
  0x74   : > { %1714 = vmatprep.subr.mxu0 %v375_v18  ;;  %p1950_p5 = scmp.lt.s32.totalorder %s1439_s14, %s1948_s9  ;;  %p1951_p2 = scmp.lt.s32.totalorder %s1949_s25, %s1943_s11 }
  0x75   : > { %1715 = vmatpush3.msra.mxu0 %v375_v18  ;;  %v367_v18 = vld [vmem:[#allocation7 + $0x18] sm:$0xff]  ;;  %p1945_p13 = pnand %p1944_p9, %p2396_p12 }
  0x76   : > { %1744 = vmatprep.subr.mxu0 %v370_v41  ;;  %p1952_p11 = por %p1951_p2, %p1950_p5 }
  0x77   : > { %p1946_p0 = pneg %p1945_p13 }
  0x79   : > { %p1953_p1 = pnand %p1952_p11, %p1946_p0 }
 0x12e   : > { %v1700_v11 = vpop.f32.mrf.mxu0 }
 0x130   : > { %v648_v13 = vpop.f32.mrf.mxu0 }
 0x131   : > { %v1686_v8 = vpop.f32.mrf.mxu1 }
 0x132   : > { %1687 = vmatprep.subr.mxu1 %v1686_v8 }
 0x133   : > { %v477_v10 = vpop.f32.mrf.mxu1  ;;  %1688 = vmatpush3.msra.mxu1 %v1686_v8 }
 0x134   : > { %1689 = vmatprep.subr.mxu1 %v477_v10 }
 0x135   : > { %1690 = vmatpush3.msra.mxu1 %v477_v10 }
 0x136   : > { %1692 = vmatmul.mubr.msk.f32.vlgmr.msra.gmra.mxu1 %vm490_vm1, %v2257_v9  ;;  %1701 = vmatprep.subr.mxu1 %v1700_v11 }
 0x137   : > { %1702 = vmatpush3.msra.mxu1 %v1700_v11  ;;  %1705 = vmatprep.mubr.msk.f32.mxu1 %vm490_vm1, %v2260_v12 }
 0x138   : > { %1703 = vmatprep.subr.mxu1 %v648_v13 }
 0x139   : > { %1704 = vmatpush3.msra.mxu1 %v648_v13 }
 0x13a   : > { %1706 = vmatmul.mubr.msk.f32.vlgmr.msra.gmra.mxu1 %vm490_vm1, %v2267_v14  ;;  %1722 = vmatprep.subr.mxu1 %v386_v33 }
 0x13b   : > { %1723 = vmatpush3.msra.mxu1 %v386_v33 }
 0x13c   : > { %1724 = vmatprep.subr.mxu1 %v385_v34 }
 0x13d   : > { %1725 = vmatpush3.msra.mxu1 %v385_v34 }
 0x13e   : > { %1726 = vmatprep.subr.mxu1 %v384_v35 }
 0x13f   : > { %1727 = vmatpush3.msra.mxu1 %v384_v35 }
 0x140   : > { %1728 = vmatprep.subr.mxu1 %v383_v36 }
 0x141   : > { %1729 = vmatpush3.msra.mxu1 %v383_v36 }
 0x142   : > { %1730 = vmatprep.subr.mxu1 %v382_v37 }
 0x143   : > { %1731 = vmatpush3.msra.mxu1 %v382_v37 }
 0x144   : > { %1732 = vmatprep.subr.mxu1 %v381_v38 }
 0x145   : > { %1733 = vmatpush3.msra.mxu1 %v381_v38 }
 0x146   : > { %1734 = vmatprep.subr.mxu1 %v380_v39 }
 0x147   : > { %1735 = vmatpush3.msra.mxu1 %v380_v39 }
 0x148   : > { %1736 = vmatprep.subr.mxu1 %v379_v40 }
 0x149   : > { %1737 = vmatpush3.msra.mxu1 %v379_v40 }
 0x14a   : > { %1762 = vmatprep.subr.mxu1 %v374_v17 }
 0x1f6   : > { %v1693_v20 = vpop.f32.mrf.mxu1 }
 0x1f7   : > { %v569_v21 = vadd.f32 %v1693_v20, %v1585_v19  ;;  %v372_v20 = vld [vmem:[#allocation7 + $0x40] sm:$0xff] }
 0x1f8   : > { %v563_v22 = vpop.f32.mrf.mxu1 }
 0x1f9   : > { %v564_v23 = vadd.f32 %v1585_v19, %v563_v22  ;;  %v573_v27 = vmax.f32 %v569_v21, 0.0  ;;  %v373_v19 = vld [vmem:[#allocation7 + $0x48] sm:$0xff]  ;;  %v371_v21 = vld [vmem:[#allocation7 + $0x38] sm:$0xff] }
 0x1fa   : > { %v1707_v25 = vpop.f32.mrf.mxu1 }
 0x1fb   : > { %v572_v26 = vmax.f32 %v564_v23, 0.0  ;;  %v739_v28 = vadd.f32 %v1707_v25, %v1590_v24  ;;  %v1598_v23 = vld [vmem:[%s2365_s5 + $0x5] ss:$0 sm:$0xff] }
 0x1fc   : > { %v733_v29 = vpop.f32.mrf.mxu1 }
 0x1fd   : > { %v734_v30 = vadd.f32 %v1590_v24, %v733_v29  ;;  %1716 = vmatprep.mubr.msk.f32.mxu0 %vm748_vm2, %v572_v26  ;;  %v743_v32 = vmax.f32 %v739_v28, 0.0 }
 0x1fe   : > { %1717 = vmatmul.mubr.msk.f32.vlgmr.msra.gmra.mxu0 %vm748_vm2, %v573_v27 }
 0x1ff   : > { %v742_v31 = vmax.f32 %v734_v30, 0.0  ;;  %1745 = vmatpush3.msra.mxu0 %v370_v41 }
 0x200   : > { %1746 = vmatprep.subr.mxu0 %v369_v15 }
 0x201   : > { %1719 = vmatprep.mubr.msk.f32.mxu0 %vm748_vm2, %v742_v31  ;;  %1747 = vmatpush3.msra.mxu0 %v369_v15 }
 0x202   : > { %1720 = vmatmul.mubr.msk.f32.gmra.mxu0 %vm748_vm2, %v743_v32  ;;  %1748 = vmatprep.subr.mxu0 %v368_v16 }
 0x203   : > { %1749 = vmatpush3.msra.mxu0 %v368_v16 }
 0x204   : > { %1750 = vmatprep.subr.mxu0 %v367_v18 }
 0x205   : > { %1751 = vmatpush3.msra.mxu0 %v367_v18  ;;  %v2022_v18 = vmov 0.0  }
 0x2be   : > { %v1718_v43 = vpop.f32.mrf.mxu0 }
 0x2bf   : > { %v833_v44 = vadd.f32 %v1718_v43, %v1593_v42 }
 0x2c0   : > { %v827_v45 = vpop.f32.mrf.mxu0 }
 0x2c1   : > { %v828_v46 = vadd.f32 %v1593_v42, %v827_v45  ;;  %v848_v48 = vsel %vm846_vm3, %v833_v44, 0.0 }
 0x2c2   : > { %v1721_v47 = vpop.f32.mrf.mxu0 }
 0x2c3   : > { %v847_v49 = vsel %vm846_vm3, %v828_v46, 0.0  ;;  %v843_v50 = vadd.f32 %v1721_v47, %v1593_v42 }
 0x2c4   : > { %v849_v51 = vadd.f32 %v848_v48, %v847_v49  ;;  %v837_v52 = vpop.f32.mrf.mxu0 }
 0x2c5   : > { %v838_v53 = vadd.f32 %v1593_v42, %v837_v52  ;;  %v857_v55 = vsel %vm846_vm3, %v843_v50, 0.0 }
 0x2c6   : > { %v850_v54 = vrot.slane %v849_v51, 4 }
 0x2c7   : > { %v856_v56 = vsel %vm846_vm3, %v838_v53, 0.0 }
 0x2c8   : > { %v851_v57 = vadd.f32 %v850_v54, %v849_v51  ;;  %v858_v58 = vadd.f32 %v857_v55, %v856_v56 }
 0x2ca   : > { %v852_v59 = vrot.slane %v851_v57, 2  ;;  %v859_v60 = vrot.slane %v858_v58, 4 }
 0x2cc   : > { %v853_v61 = vadd.f32 %v852_v59, %v851_v57  ;;  %v860_v62 = vadd.f32 %v859_v60, %v858_v58 }
 0x2ce   : > { %v854_v63 = vrot.slane %v853_v61, 1  ;;  %v861_v0 = vrot.slane %v860_v62, 2 }
 0x2d0   : > { %v862_v1 = vadd.f32 %v861_v0, %v860_v62  ;;  %v855_v2 = vadd.f32 %v854_v63, %v853_v61 }
 0x2d2   : > { %v863_v3 = vrot.slane %v862_v1, 1  ;;  %v868_v5 = vmul.f32 0.1, %v855_v2 }
 0x2d4   : > { %v864_v4 = vadd.f32 %v863_v3, %v862_v1  ;;  %v869_v11 = vadd.f32 %v868_v5, %v838_v53  ;;  %v870_v13 = vadd.f32 %v868_v5, %v843_v50 }
 0x2d6   : > { %v865_v6 = vmul.f32 0.1, %v864_v4 }
 0x2d8   : > { %v866_v8 = vadd.f32 %v865_v6, %v828_v46  ;;  %v867_v10 = vadd.f32 %v865_v6, %v833_v44 }
 0x2da   : > { %1738 = vmatprep.mubr.msk.f32.mxu1 %vm846_vm3, %v866_v8 }
 0x2db   : > { %1739 = vmatmul.mubr.msk.f32.vlgmr.msra.gmra.mxu1 %vm846_vm3, %v867_v10 }
 0x2dc   : > { %1741 = vmatprep.mubr.msk.f32.mxu1 %vm846_vm3, %v869_v11  ;;  %1763 = vmatpush3.msra.mxu1 %v374_v17  ;;  %v390_v17 = vld [vmem:[#allocation7 + $0xd0] sm:$0xff] }
 0x2dd   : > { %1764 = vmatprep.subr.mxu1 %v373_v19 }
 0x2de   : > { %1765 = vmatpush3.msra.mxu1 %v373_v19  ;;  %v389_v19 = vld [vmem:[#allocation7 + $0xc8] sm:$0xff] }
 0x2df   : > { %1742 = vmatmul.mubr.msk.f32.gmra.mxu1 %vm846_vm3, %v870_v13  ;;  %1766 = vmatprep.subr.mxu1 %v372_v20 }
 0x2e0   : > { %1767 = vmatpush3.msra.mxu1 %v372_v20  ;;  %v388_v20 = vld [vmem:[#allocation7 + $0xc0] sm:$0xff] }
 0x2e1   : > { %1768 = vmatprep.subr.mxu1 %v371_v21 }
 0x2e2   : > { %1769 = vmatpush3.msra.mxu1 %v371_v21  ;;  %v387_v21 = vld [vmem:[#allocation7 + $0xb8] sm:$0xff] }
 0x39b   : > { %v1740_v22 = vpop.f32.mrf.mxu1 }
 0x39c   : > { %v959_v26 = vadd.f32 %v1740_v22, %v1598_v23 }
 0x39d   : > { %v953_v24 = vpop.f32.mrf.mxu1 }
 0x39e   : > { %v954_v25 = vadd.f32 %v1598_v23, %v953_v24 }
 0x39f   : > { %v1743_v27 = vpop.f32.mrf.mxu1 }
 0x3a0   : > { %1752 = vmatprep.mubr.msk.f32.mxu0 %vm748_vm2, %v954_v25  ;;  %v969_v30 = vadd.f32 %v1743_v27, %v1598_v23 }
 0x3a1   : > { %v963_v28 = vpop.f32.mrf.mxu1  ;;  %1753 = vmatmul.mubr.msk.f32.vlgmr.msra.gmra.mxu0 %vm748_vm2, %v959_v26 }
 0x3a2   : > { %v964_v29 = vadd.f32 %v1598_v23, %v963_v28  ;;  %1759 = vmatprep.mubr.msk.f32.mxu0 %vm490_vm1, %v2253_v7  ;;  %v1605_v7 = vld [vmem:[%s2365_s5 + $0x2] ss:$0 sm:$0xff] }
 0x3a4   : > { %1770 = vmatprep.mubr.msk.f32.mxu1 %vm748_vm2, %v964_v29 }
 0x3a5   : > { %1771 = vmatmul.mubr.msk.f32.vlgmr.msra.gmra.mxu1 %vm748_vm2, %v969_v30  ;;  %v1419_v30 = vlaneseq }
 0x461   : > { %v1754_v31 = vpop.f32.mrf.mxu0 }
 0x462   : > { %1755 = vmatprep.subr.mxu0 %v1754_v31 }
 0x463   : > { %v1044_v32 = vpop.f32.mrf.mxu0  ;;  %1756 = vmatpush3.msra.mxu0 %v1754_v31  ;;  %v1420_v31 = vshrl.u32 %v1419_v30, 7 }
 0x464   : > { %1757 = vmatprep.subr.mxu0 %v1044_v32 }
 0x465   : > { %1758 = vmatpush3.msra.mxu0 %v1044_v32  ;;  %v1772_v33 = vpop.f32.mrf.mxu1  ;;  %v397_v32 = vld [vmem:[%s2365_s5 + $0x6] sm:$0x1] }
 0x466   : > { %1760 = vmatmul.mubr.msk.f32.vlgmr.msra.gmra.mxu0 %vm490_vm1, %v2257_v9  ;;  %1773 = vmatprep.subr.mxu0 %v1772_v33  ;;  %v1610_v9 = vld [vmem:[%s2365_s5 + $0x3] ss:$0 sm:$0xff] }
 0x467   : > { %v1206_v34 = vpop.f32.mrf.mxu1  ;;  %1774 = vmatpush3.msra.mxu0 %v1772_v33  ;;  %1777 = vmatprep.mubr.msk.f32.mxu0 %vm490_vm1, %v2260_v12  ;;  %v1421_v33 = vsub.s32 0, %v1420_v31 }
 0x468   : > { %1775 = vmatprep.subr.mxu0 %v1206_v34 }
 0x469   : > { %1776 = vmatpush3.msra.mxu0 %v1206_v34 }
 0x46a   : > { %1778 = vmatmul.mubr.msk.f32.vlgmr.msra.gmra.mxu0 %vm490_vm1, %v2267_v14  ;;  %1780 = vmatprep.subr.mxu0 %v2022_v18 }
 0x46b   : > { %1788 = vmatprep.mubr.msk.f32.mxu0 %vm2023_vm6, %v2022_v18  ;;  %1781 = vmatpush3.msra.mxu0 %v390_v17 }
 0x46c   : > { %1782 = vmatprep.subr.mxu0 %v2022_v18 }
 0x46d   : > { %1783 = vmatpush3.msra.mxu0 %v389_v19 }
 0x46e   : > { %1784 = vmatprep.subr.mxu0 %v2022_v18 }
 0x46f   : > { %1785 = vmatpush3.msra.mxu0 %v388_v20 }
 0x470   : > { %1786 = vmatprep.subr.mxu0 %v2022_v18 }
 0x471   : > { %1787 = vmatpush3.msra.mxu0 %v387_v21 }
 0x526   : > { %v1761_v35 = vpop.f32.mrf.mxu0 }
 0x527   : > { %v1129_v36 = vadd.f32 %v1761_v35, %v1605_v7 }
 0x528   : > { %v1123_v37 = vpop.f32.mrf.mxu0 }
 0x529   : > { %v1133_v38 = vmax.f32 %v1129_v36, 0.0  ;;  %v1124_v39 = vadd.f32 %v1605_v7, %v1123_v37 }
 0x52a   : > { %v1779_v40 = vpop.f32.mrf.mxu0 }
 0x52b   : > { %v1132_v12 = vmax.f32 %v1124_v39, 0.0  ;;  %v1291_v41 = vadd.f32 %v1779_v40, %v1610_v9  ;;  %v1297_v43 = vsel %vm748_vm2, %v1133_v38, 0.0 }
 0x52c   : > { %v1285_v42 = vpop.f32.mrf.mxu0 }
 0x52d   : > { %v1296_v14 = vsel %vm748_vm2, %v1132_v12, 0.0  ;;  %v1295_v44 = vmax.f32 %v1291_v41, 0.0  ;;  %v1286_v45 = vadd.f32 %v1610_v9, %v1285_v42 }
 0x52e   : > { %v1298_v46 = vadd.f32 %v1297_v43, %v1296_v14 }
 0x52f   : > { %v1294_v47 = vmax.f32 %v1286_v45, 0.0  ;;  %v1308_v49 = vsel %vm748_vm2, %v1295_v44, -inf }
 0x530   : > { %v1299_v48 = vrot.slane %v1298_v46, 4 }
 0x531   : > { %v1307_v50 = vsel %vm748_vm2, %v1294_v47, -inf }
 0x532   : > { %v1300_v51 = vadd.f32 %v1299_v48, %v1298_v46  ;;  %v1309_v52 = vmax.f32 %v1307_v50, %v1308_v49 }
 0x534   : > { %v1301_v53 = vrot.slane %v1300_v51, 2  ;;  %v1310_v54 = vrot.slane %v1309_v52, 4 }
 0x536   : > { %v1311_v55 = vmax.f32 %v1309_v52, %v1310_v54  ;;  %v1302_v56 = vadd.f32 %v1301_v53, %v1300_v51 }
 0x538   : > { %v1312_v57 = vrot.slane %v1311_v55, 2  ;;  %v1303_v58 = vrot.slane %v1302_v56, 1 }
 0x53a   : > { %v1304_v59 = vadd.f32 %v1303_v58, %v1302_v56  ;;  %v1313_v60 = vmax.f32 %v1311_v55, %v1312_v57 }
 0x53c   : > { %v1314_v61 = vrot.slane %v1313_v60, 1  ;;  %v1306_v62 = vmul.f32 0.0625, %v1304_v59 }
 0x53e   : > { %v1315_v63 = vmax.f32 %v1313_v60, %v1314_v61 }
 0x540   : > { %v1317_v0 = vsel %vm1316_vm4, %v1306_v62, %v1315_v63 }
 0x541   : > { %v1319_v1 = vsel %vm1318_vm5, %v1317_v0, 0.0 }
 0x542   : > { %1320 = vadd.xlane.f32.xlu0 %v1319_v1 }
 0x5cb   : > { %v1321_v2 = vpop.xlane.xlu0 %1320 }
 0x5cc   : > { %v1323_v3 = vmul.f32 0.03125, %v1321_v2 }
 0x5ce   : > { %v1324_v4 = vsub.f32 %v1317_v0, %v1323_v3 }
 0x5d0   : > { %v1325_v5 = vmul.f32 %v1324_v4, %v1324_v4 }
 0x5d2   : > { %v1326_v6 = vsel %vm1318_vm5, %v1325_v5, 0.0 }
 0x5d3   : > { %1327 = vadd.xlane.f32.xlu0 %v1326_v6 }
 0x65c   : > { %v1328_v8 = vpop.xlane.xlu0 %1327 }
 0x65d   : > { %v1329_v10 = vmul.f32 0.032258064, %v1328_v8 }
 0x65f   : > { %1857 = vrsqrt.f32 %v1329_v10 }
 0x66c   : > { %v1858_v11 = vpop.eup %1857 }
 0x66d   : > { %v1331_v13 = vmul.f32 %v1858_v11, %v1324_v4 }
 0x66f   : > { %v1332_v15 = vsel %vm1318_vm5, %v1331_v13, inf  ;;  %v1335_v16 = vsel %vm1318_vm5, %v1331_v13, -inf }
 0x670   : > { %1333 = vmin.xlane.f32.xlu1 %v1332_v15 }
 0x674   : > { %1336 = vmax.xlane.f32.xlu1 %v1335_v16 }
 0x6f9   : > { %v1334_v22 = vpop.xlane.xlu1 %1333 }
 0x6fa   : > { %v1338_v25 = vsub.f32 %v1331_v13, %v1334_v22 }
 0x6fd   : > { %v1337_v23 = vpop.xlane.xlu1 %1336 }
 0x6fe   : > { %v1339_v24 = vsub.f32 %v1337_v23, %v1334_v22 }
 0x700   : > { %1859 = vrcp.f32 %v1339_v24 }
 0x70d   : > { %v1860_v26 = vpop.eup %1859 }
 0x70e   : > { %v1341_v27 = vmul.f32 %v1860_v26, %v1338_v25 }
 0x710   : > { %v1343_v28 = vrot.slane %v1341_v27, 1 }
 0x712   : > { %v1345_v29 = vadd.f32 %v1343_v28, %v1341_v27 }
 0x714   : > { %1789 = vmatmul.mubr.msk.f32.vlgmr.msra.gmra.mxu0 %vm748_vm2, %v1345_v29 }
 0x7d4   : > { %v1415_v34 = vpop.f32.mrf.mxu0 }
 0x7d5   : > { %v1416_v7 = vadd.f32 %v1415_v34, %v397_v32 }
 0x7d6   : > { %v1790_v35 = vpop.f32.mrf.mxu0 }
 0x7d7   : > { %v1422_v36 = vrot.slane %v1416_v7, %v1421_v33 }
 0x7d9   : > { %1423 = vst [vmem:[%s353_s27] sm:$0xff] %v1422_v36 }
 0x7da   : > { %1956 = shalt.err (!%p1953_p1)
}
 0x7db   : > { %s1957_s13 = scalar_lea.hbm %s1436_s26, 128  ;;  %s1961_s12 = scalar_lea.hbm %s2366_s6, 512 }
 0x7dc   : > { %p1958_p4 = scmp.ne.s32.totalorder %s1436_s26, %s1957_s13  ;;  %p1962_p8 = scmp.lt.s32.totalorder %s1436_s26, %s2366_s6 }
 0x7dd   : > { %p1963_p10 = scmp.lt.s32.totalorder %s1961_s12, %s1957_s13 }
 0x7de   : > { %p1959_p3 = pnand %p1958_p4, %p2396_p12 }
 0x7df   : > { %p1964_p6 = por %p1963_p10, %p1962_p8 }
 0x7e0   : > { %p1960_p7 = pneg %p1959_p3 }
 0x7e2   : > { %p1965_p9 = pnand %p1964_p6, %p1960_p7 }
 0x7e4   : > { %1968 = shalt.err (!%p1965_p9)
}
 0x7e5   : > { %1799 = dma.vmem_to_hbm [thread:$0]  (%p2396_p12), %s1439_s14, 128, %s1436_s26, %s1425_s7  }
 0x7e6 PF: > { %p1819_p13 = scmp.ge.s32.totalorder %s2015_s24, 2  ;;  %s1450_s4 = sand.u32 1, %s2003_s21  }
 0x7e7   : > { %p2397_p0 = scmp.ne.s32.totalorder %s2381_s28, 0  ;;  %s1451_s23 = scalar_lea.sflag [#allocation4], %s1450_s4 }
 0x7e9   : > { %p1813_p5 = pnand %p1819_p13, %p2397_p0 }
 0x7eb   : > { %p1814_p2 = pneg %p1813_p5 }
 0x7ed   : > { %1998 = dma.done.wait (%p1814_p2), %s1451_s23, 128  }
 0x7ee   : > { %2000 = vsyncadd (%p1814_p2), %s1451_s23, 4294967168  ;;  %s2398_s24 = sld [smem:[#allocation14_spill]]  ;;  %s2401_s21 = smov %s2007_s22 }
 0x7ef   : > { %s2399_s17 = sld [smem:[#allocation13_spill]] }
 0x7f0   : > { %s2400_s23 = sld [smem:[#allocation15_spill]] }
 0x7f4   : > { %p22_p11 = scmp.ge.s32.totalorder %s2398_s24, 6  }
 0x7f5   : > { %s2402_s22 = smov %s2399_s17 }
 0x7f6   :  { %24 = sbr.rel (!%p22_p11) target bundleno = 10 (0xa), region = 112 }
 0x7fb   :  { %1456 = vsyncpa [#allocation3], 1 }
 0x7fc   :  { %1458 = vsyncpa [#allocation3 + $0x1], 1 }
 0x7fd   :  { %1459 = vsyncpa [#allocation6], 1 }
 0x7fe   :  { %1461 = vsyncpa [#allocation6 + $0x1], 1 }
 0x7ff   :  { %1462 = vsyncpa [#allocation4], 1 }
 0x800   :  { %1464 = vsyncpa [#allocation4 + $0x1], 1 }

</bundles_post_ra>
